<compile_context>
chip_gen: v7x
topology: tpu7x:2x2x1
jax: 0.10.0
libtpu: 0.0.40
codegen_flags: <defaults>
</compile_context>

<pallas_src>
import functools

import numpy as np
import jax
import jax.numpy as jnp
from jax import lax
from jax.experimental import pallas as pl
from jax.experimental.pallas import tpu as pltpu

NUM_CLASSES = 2          # CAS_COR.num_classes
NUM_ANCHORS = 10         # CAS_COR.num_anchors
PREC_LO = 0.001          # CAS_COR.precision_range_lower
PREC_HI = 1.0            # CAS_COR.precision_range_upper


def _round_up(x, m):
    return ((x + m - 1) // m) * m


def _cas_cor_kernel(x_ref, tgt_ref, bias_ref, posw_ref, negw_ref, lterm_ref,
                    out_ref, acc_ref, cnt_ref, *, n_valid, num_classes,
                    num_anchors):
    """Processes one (C, TILE) slab of pixels per grid step.

    acc_ref : (1, 1) running sum of weighted hinge terms over (n, c, a).
    cnt_ref : (C, 1) running per-class positive-label counts (for class priors).
    The scalar loss is written to out_ref on the last grid step only.
    """
    f32 = jnp.float32
    C, A = num_classes, num_anchors
    A_pad = bias_ref.shape[0] // C           # zero-weighted padded anchors
    step = pl.program_id(0)
    last = pl.num_programs(0) - 1

    @pl.when(step == 0)
    def _init():
        acc_ref[...] = jnp.zeros_like(acc_ref)
        cnt_ref[...] = jnp.zeros_like(cnt_ref)

    tgt = tgt_ref[...]                                   # (1, T) int32, -1 == pad
    valid = (tgt >= 0).astype(f32)                       # (1, T)
    cls = lax.broadcasted_iota(jnp.int32, (C, 1), 0)     # (C, 1) class ids
    lab_all = (tgt == cls).astype(f32)                   # (C, T) one-hot labels
    cnt_ref[...] = cnt_ref[...] + jnp.sum(lab_all, axis=1, keepdims=True)

    hinge = jnp.zeros((1, 1), f32)
    for c in range(C):                                   # static loop, C == 2
        lg = x_ref[pl.ds(c, 1), :]                       # (1, T) class-c logits
        lab = lab_all[c:c + 1, :]                        # (1, T) positives
        nlab = valid - lab                               # (1, T) valid negatives
        bc = bias_ref[pl.ds(c * A_pad, A_pad), :]        # (A_pad, 1) biases
        pw = posw_ref[pl.ds(c * A_pad, A_pad), :]        # (A_pad, 1) 1+lam*(1-pv)
        nw = negw_ref[pl.ds(c * A_pad, A_pad), :]        # (A_pad, 1) lam*pv
        lgb = lg - bc                                    # (A_pad, T) logits-bias
        pos = jnp.maximum(1.0 - lgb, 0.0) * lab          # (A_pad, T)
        neg = jnp.maximum(1.0 + lgb, 0.0) * nlab         # (A_pad, T)
        per_anchor = jnp.sum(pw * pos + nw * neg, axis=1, keepdims=True)  # (A_pad,1)
        hinge = hinge + jnp.sum(per_anchor, axis=0, keepdims=True)        # (1,1)
    acc_ref[...] = acc_ref[...] + hinge

    @pl.when(step == last)
    def _finalize():
        # build_class_priors with unit weights: (count_c + 1) / (N + 2)
        priors = (cnt_ref[...] + 1.0) * (1.0 / (n_valid + 2.0))           # (C, 1)
        # lambda_term summed over anchors, weighted by class priors
        lterm = jnp.sum(priors * lterm_ref[...], axis=0, keepdims=True)   # (1, 1)
        # loss = per_anchor_loss.sum(2) * delta / (hi - lo), then .mean():
        #   delta / (hi - lo) == 1 / A
        loss = (acc_ref[...] - n_valid * lterm) / (A * n_valid * C)
        out_ref[...] = loss.astype(f32)


def cas_cor_loss(logits, targets, biases, lambdas, precision_values,
                 *, max_tile=8192):
    """CAS_COR.forward(logits, targets) with reduce=True, size_average=True.

    logits : (..., C) raw scores (flattened to (N, C), like logits.view(-1, C)).
    targets: (...,)   integer class ids in [0, C), flattened to (N,).
    """
    f32 = jnp.float32
    C = logits.shape[-1]
    A = precision_values.shape[-1]
    A_pad = _round_up(A, 8)

    lg = jnp.reshape(logits, (-1, C)).astype(f32)             # (N, C)
    tg = jnp.reshape(targets, (-1,)).astype(jnp.int32)        # (N,)
    N = lg.shape[0]

    # ---- lane-dense layout + pixel padding (padded pixels tagged -1) ----------
    n_pad = _round_up(N, 128)
    tile = min(n_pad, max_tile)
    n_pad = _round_up(n_pad, tile)
    x_cn = jnp.pad(jnp.transpose(lg), ((0, 0), (0, n_pad - N)))            # (C, n_pad)
    tgt_row = jnp.pad(tg[None, :], ((0, 0), (0, n_pad - N)),
                      constant_values=-1)                                  # (1, n_pad)

    # ---- O(C*A) parameter preprocessing (LagrangeMultiplier.forward = clamp) --
    lam = jnp.maximum(lambdas.astype(f32), 0.0)                            # (C, A)
    pv = jnp.reshape(precision_values.astype(f32), (1, A))                 # (1, A)
    pad_a = ((0, 0), (0, A_pad - A))
    bias_cols = jnp.reshape(jnp.pad(biases.astype(f32), pad_a), (C * A_pad, 1))
    posw_cols = jnp.reshape(jnp.pad(1.0 + lam * (1.0 - pv), pad_a), (C * A_pad, 1))
    negw_cols = jnp.reshape(jnp.pad(lam * pv, pad_a), (C * A_pad, 1))
    lterm_col = jnp.sum(lam * (1.0 - pv), axis=1, keepdims=True)           # (C, 1)

    kernel = functools.partial(_cas_cor_kernel, n_valid=float(N),
                               num_classes=C, num_anchors=A)
    out = pl.pallas_call(
        kernel,
        out_shape=jax.ShapeDtypeStruct((1, 1), jnp.float32),
        grid_spec=pltpu.PrefetchScalarGridSpec(
            num_scalar_prefetch=0,
            grid=(n_pad // tile,),
            in_specs=[
                pl.BlockSpec((C, tile), lambda i: (0, i)),          # logits (C, N)
                pl.BlockSpec((1, tile), lambda i: (0, i)),          # targets (1, N)
                pl.BlockSpec((C * A_pad, 1), lambda i: (0, 0)),     # biases
                pl.BlockSpec((C * A_pad, 1), lambda i: (0, 0)),     # positive weights
                pl.BlockSpec((C * A_pad, 1), lambda i: (0, 0)),     # negative weights
                pl.BlockSpec((C, 1), lambda i: (0, 0)),             # lambda-term coeffs
            ],
            out_specs=pl.BlockSpec((1, 1), lambda i: (0, 0)),
            scratch_shapes=[pltpu.VMEM((1, 1), jnp.float32),        # hinge accumulator
                            pltpu.VMEM((C, 1), jnp.float32)],       # label counts
        ),
        compiler_params=pltpu.CompilerParams(
            dimension_semantics=("arbitrary",)),
    )(x_cn, tgt_row, bias_cols, posw_cols, negw_cols, lterm_col)
    return out[0, 0]


if __name__ == "__main__":
    # TODO(synk): the debug print()s in _prepare_labels_weights and the custom
    # LagrangeMultiplier backward (gradient negation) are not part of the
    # forward value and are intentionally not reproduced.
    key = jax.random.PRNGKey(0)
    kx, kt = jax.random.split(key)
    B, H, W = 2, 16, 16
    N = B * H * W                              # 512 pixels
    C, A = NUM_CLASSES, NUM_ANCHORS

    logits = jax.random.normal(kx, (N, C), jnp.float32)
    targets = (jax.random.uniform(kt, (N,)) > 0.6).astype(jnp.int32)

    # Parameters exactly as CAS_COR.__init__: biases.zero_(), lambdas.fill_(1.0)
    biases = jnp.zeros((C, A), jnp.float32)
    lambdas = jnp.ones((C, A), jnp.float32)
    precision_values = jnp.asarray(
        np.linspace(PREC_LO, PREC_HI, A + 1)[1:], jnp.float32)

    loss = cas_cor_loss(logits, targets, biases, lambdas, precision_values)
    jax.block_until_ready(loss)
    print("KERNEL_OK")
</pallas_src>

<mosaic_0001>
module attributes {stable_mosaic.version = 11 : i64} {
  func.func @_cas_cor_kernel(%arg0: i32, %arg1: memref<2x512xf32, #tpu.memory_space<vmem>>, %arg2: memref<1x512xi32, #tpu.memory_space<vmem>>, %arg3: memref<32x1xf32, #tpu.memory_space<vmem>>, %arg4: memref<32x1xf32, #tpu.memory_space<vmem>>, %arg5: memref<32x1xf32, #tpu.memory_space<vmem>>, %arg6: memref<2x1xf32, #tpu.memory_space<vmem>>, %arg7: memref<1x1xf32, #tpu.memory_space<vmem>>, %arg8: memref<1x1xf32, #tpu.memory_space<vmem>>, %arg9: memref<2x1xf32, #tpu.memory_space<vmem>>) attributes {dimension_semantics = [#tpu.dimension_semantics<arbitrary>], iteration_bounds = array<i64: 1>, scalar_prefetch = 0 : i64, scratch_operands = 2 : i64, tpu.core_type = #tpu.core_type<tc>, window_params = [{transform_indices = @transform_0, window_bounds = array<i64: 2, 512>}, {transform_indices = @transform_1, window_bounds = array<i64: 1, 512>}, {pipeline_mode = #tpu.pipeline_mode<synchronous>, transform_indices = @transform_2, window_bounds = array<i64: 32, 1>}, {pipeline_mode = #tpu.pipeline_mode<synchronous>, transform_indices = @transform_3, window_bounds = array<i64: 32, 1>}, {pipeline_mode = #tpu.pipeline_mode<synchronous>, transform_indices = @transform_4, window_bounds = array<i64: 32, 1>}, {pipeline_mode = #tpu.pipeline_mode<synchronous>, transform_indices = @transform_5, window_bounds = array<i64: 2, 1>}, {pipeline_mode = #tpu.pipeline_mode<synchronous>, transform_indices = @transform_6, window_bounds = array<i64: 1, 1>}]} {
    %c0_i32 = arith.constant 0 : i32
    %0 = arith.cmpi eq, %arg0, %c0_i32 : i32
    %1 = arith.extui %0 : i1 to i32
    %c0_i32_0 = arith.constant 0 : i32
    %2 = arith.cmpi ne, %1, %c0_i32_0 : i32
    scf.if %2 {
      %cst_40 = arith.constant 0.000000e+00 : f32
      %88 = vector.broadcast %cst_40 : f32 to vector<1x1xf32>
      %c0_41 = arith.constant 0 : index
      %c0_42 = arith.constant 0 : index
      %89 = vector.load %arg8[%c0_41, %c0_42] : memref<1x1xf32, #tpu.memory_space<vmem>>, vector<1x1xf32>
      tpu.vector_store %arg8[%c0_41, %c0_42], %88 {strides = array<i32>} : memref<1x1xf32, #tpu.memory_space<vmem>>, vector<1x1xf32>,
      %cst_43 = arith.constant 0.000000e+00 : f32
      %90 = vector.broadcast %cst_43 : f32 to vector<2x1xf32>
      %c0_44 = arith.constant 0 : index
      %c0_45 = arith.constant 0 : index
      %91 = vector.load %arg9[%c0_44, %c0_45] : memref<2x1xf32, #tpu.memory_space<vmem>>, vector<2x1xf32>
      tpu.vector_store %arg9[%c0_44, %c0_45], %90 {strides = array<i32>} : memref<2x1xf32, #tpu.memory_space<vmem>>, vector<2x1xf32>,
    } else {
    }
    %c0 = arith.constant 0 : index
    %c0_1 = arith.constant 0 : index
    %3 = vector.load %arg2[%c0, %c0_1] : memref<1x512xi32, #tpu.memory_space<vmem>>, vector<1x512xi32>
    %c0_i32_2 = arith.constant 0 : i32
    %4 = vector.broadcast %c0_i32_2 : i32 to vector<1x512xi32>
    %5 = arith.cmpi sge, %3, %4 : vector<1x512xi32>
    %6 = arith.extui %5 : vector<1x512xi1> to vector<1x512xi32>
    %7 = arith.sitofp %6 : vector<1x512xi32> to vector<1x512xf32>
    %8 = tpu.iota {dimensions = array<i32: 0>} : vector<2x1xi32>
    %9 = vector.broadcast %3 : vector<1x512xi32> to vector<2x512xi32>
    %10 = vector.broadcast %8 : vector<2x1xi32> to vector<2x512xi32>
    %11 = arith.cmpi eq, %9, %10 : vector<2x512xi32>
    %12 = arith.extui %11 : vector<2x512xi1> to vector<2x512xi32>
    %13 = arith.sitofp %12 : vector<2x512xi32> to vector<2x512xf32>
    %c0_3 = arith.constant 0 : index
    %c0_4 = arith.constant 0 : index
    %14 = vector.load %arg9[%c0_3, %c0_4] : memref<2x1xf32, #tpu.memory_space<vmem>>, vector<2x1xf32>
    %cst = arith.constant dense<0.000000e+00> : vector<2xf32>
    %15 = vector.multi_reduction <add>, %13, %cst [1] : vector<2x512xf32> to vector<2xf32>
    %16 = vector.shape_cast %15 : vector<2xf32> to vector<2x1xf32>
    %17 = arith.addf %14, %16 : vector<2x1xf32>
    %c0_5 = arith.constant 0 : index
    %c0_6 = arith.constant 0 : index
    %18 = vector.load %arg9[%c0_5, %c0_6] : memref<2x1xf32, #tpu.memory_space<vmem>>, vector<2x1xf32>
    tpu.vector_store %arg9[%c0_5, %c0_6], %17 {strides = array<i32>} : memref<2x1xf32, #tpu.memory_space<vmem>>, vector<2x1xf32>,
    %cst_7 = arith.constant 0.000000e+00 : f32
    %19 = vector.broadcast %cst_7 : f32 to vector<1x1xf32>
    %c0_8 = arith.constant 0 : index
    %c0_9 = arith.constant 0 : index
    %20 = vector.load %arg1[%c0_8, %c0_9] : memref<2x512xf32, #tpu.memory_space<vmem>>, vector<1x512xf32>
    %21 = vector.extract_strided_slice %13 {offsets = [0, 0], sizes = [1, 512], strides = [1, 1]} : vector<2x512xf32> to vector<1x512xf32>
    %22 = arith.subf %7, %21 : vector<1x512xf32>
    %c0_10 = arith.constant 0 : index
    %c0_11 = arith.constant 0 : index
    %23 = vector.load %arg3[%c0_10, %c0_11] : memref<32x1xf32, #tpu.memory_space<vmem>>, vector<16x1xf32>
    %c0_12 = arith.constant 0 : index
    %c0_13 = arith.constant 0 : index
    %24 = vector.load %arg4[%c0_12, %c0_13] : memref<32x1xf32, #tpu.memory_space<vmem>>, vector<16x1xf32>
    %c0_14 = arith.constant 0 : index
    %c0_15 = arith.constant 0 : index
    %25 = vector.load %arg5[%c0_14, %c0_15] : memref<32x1xf32, #tpu.memory_space<vmem>>, vector<16x1xf32>
    %26 = vector.broadcast %20 : vector<1x512xf32> to vector<16x512xf32>
    %27 = vector.broadcast %23 : vector<16x1xf32> to vector<16x512xf32>
    %28 = arith.subf %26, %27 : vector<16x512xf32>
    %cst_16 = arith.constant 1.000000e+00 : f32
    %29 = vector.broadcast %cst_16 : f32 to vector<16x512xf32>
    %30 = arith.subf %29, %28 : vector<16x512xf32>
    %cst_17 = arith.constant 0.000000e+00 : f32
    %31 = vector.broadcast %cst_17 : f32 to vector<16x512xf32>
    %32 = arith.maximumf %30, %31 : vector<16x512xf32>
    %33 = vector.broadcast %21 : vector<1x512xf32> to vector<16x512xf32>
    %34 = arith.mulf %32, %33 : vector<16x512xf32>
    %cst_18 = arith.constant 1.000000e+00 : f32
    %35 = vector.broadcast %cst_18 : f32 to vector<16x512xf32>
    %36 = arith.addf %35, %28 : vector<16x512xf32>
    %cst_19 = arith.constant 0.000000e+00 : f32
    %37 = vector.broadcast %cst_19 : f32 to vector<16x512xf32>
    %38 = arith.maximumf %36, %37 : vector<16x512xf32>
    %39 = vector.broadcast %22 : vector<1x512xf32> to vector<16x512xf32>
    %40 = arith.mulf %38, %39 : vector<16x512xf32>
    %41 = vector.broadcast %24 : vector<16x1xf32> to vector<16x512xf32>
    %42 = arith.mulf %41, %34 : vector<16x512xf32>
    %43 = vector.broadcast %25 : vector<16x1xf32> to vector<16x512xf32>
    %44 = arith.mulf %43, %40 : vector<16x512xf32>
    %45 = arith.addf %42, %44 : vector<16x512xf32>
    %cst_20 = arith.constant dense<0.000000e+00> : vector<16xf32>
    %46 = vector.multi_reduction <add>, %45, %cst_20 [1] : vector<16x512xf32> to vector<16xf32>
    %47 = vector.shape_cast %46 : vector<16xf32> to vector<16x1xf32>
    %cst_21 = arith.constant dense<0.000000e+00> : vector<1xf32>
    %48 = vector.multi_reduction <add>, %47, %cst_21 [0] : vector<16x1xf32> to vector<1xf32>
    %49 = vector.shape_cast %48 : vector<1xf32> to vector<1x1xf32>
    %50 = arith.addf %19, %49 : vector<1x1xf32>
    %c1 = arith.constant 1 : index
    %c0_22 = arith.constant 0 : index
    %51 = vector.load %arg1[%c1, %c0_22] : memref<2x512xf32, #tpu.memory_space<vmem>>, vector<1x512xf32>
    %52 = vector.extract_strided_slice %13 {offsets = [1, 0], sizes = [1, 512], strides = [1, 1]} : vector<2x512xf32> to vector<1x512xf32>
    %53 = arith.subf %7, %52 : vector<1x512xf32>
    %c16 = arith.constant 16 : index
    %c0_23 = arith.constant 0 : index
    %54 = vector.load %arg3[%c16, %c0_23] : memref<32x1xf32, #tpu.memory_space<vmem>>, vector<16x1xf32>
    %c16_24 = arith.constant 16 : index
    %c0_25 = arith.constant 0 : index
    %55 = vector.load %arg4[%c16_24, %c0_25] : memref<32x1xf32, #tpu.memory_space<vmem>>, vector<16x1xf32>
    %c16_26 = arith.constant 16 : index
    %c0_27 = arith.constant 0 : index
    %56 = vector.load %arg5[%c16_26, %c0_27] : memref<32x1xf32, #tpu.memory_space<vmem>>, vector<16x1xf32>
    %57 = vector.broadcast %51 : vector<1x512xf32> to vector<16x512xf32>
    %58 = vector.broadcast %54 : vector<16x1xf32> to vector<16x512xf32>
    %59 = arith.subf %57, %58 : vector<16x512xf32>
    %cst_28 = arith.constant 1.000000e+00 : f32
    %60 = vector.broadcast %cst_28 : f32 to vector<16x512xf32>
    %61 = arith.subf %60, %59 : vector<16x512xf32>
    %cst_29 = arith.constant 0.000000e+00 : f32
    %62 = vector.broadcast %cst_29 : f32 to vector<16x512xf32>
    %63 = arith.maximumf %61, %62 : vector<16x512xf32>
    %64 = vector.broadcast %52 : vector<1x512xf32> to vector<16x512xf32>
    %65 = arith.mulf %63, %64 : vector<16x512xf32>
    %cst_30 = arith.constant 1.000000e+00 : f32
    %66 = vector.broadcast %cst_30 : f32 to vector<16x512xf32>
    %67 = arith.addf %66, %59 : vector<16x512xf32>
    %cst_31 = arith.constant 0.000000e+00 : f32
    %68 = vector.broadcast %cst_31 : f32 to vector<16x512xf32>
    %69 = arith.maximumf %67, %68 : vector<16x512xf32>
    %70 = vector.broadcast %53 : vector<1x512xf32> to vector<16x512xf32>
    %71 = arith.mulf %69, %70 : vector<16x512xf32>
    %72 = vector.broadcast %55 : vector<16x1xf32> to vector<16x512xf32>
    %73 = arith.mulf %72, %65 : vector<16x512xf32>
    %74 = vector.broadcast %56 : vector<16x1xf32> to vector<16x512xf32>
    %75 = arith.mulf %74, %71 : vector<16x512xf32>
    %76 = arith.addf %73, %75 : vector<16x512xf32>
    %cst_32 = arith.constant dense<0.000000e+00> : vector<16xf32>
    %77 = vector.multi_reduction <add>, %76, %cst_32 [1] : vector<16x512xf32> to vector<16xf32>
    %78 = vector.shape_cast %77 : vector<16xf32> to vector<16x1xf32>
    %cst_33 = arith.constant dense<0.000000e+00> : vector<1xf32>
    %79 = vector.multi_reduction <add>, %78, %cst_33 [0] : vector<16x1xf32> to vector<1xf32>
    %80 = vector.shape_cast %79 : vector<1xf32> to vector<1x1xf32>
    %81 = arith.addf %50, %80 : vector<1x1xf32>
    %c0_34 = arith.constant 0 : index
    %c0_35 = arith.constant 0 : index
    %82 = vector.load %arg8[%c0_34, %c0_35] : memref<1x1xf32, #tpu.memory_space<vmem>>, vector<1x1xf32>
    %83 = arith.addf %82, %81 : vector<1x1xf32>
    %c0_36 = arith.constant 0 : index
    %c0_37 = arith.constant 0 : index
    %84 = vector.load %arg8[%c0_36, %c0_37] : memref<1x1xf32, #tpu.memory_space<vmem>>, vector<1x1xf32>
    tpu.vector_store %arg8[%c0_36, %c0_37], %83 {strides = array<i32>} : memref<1x1xf32, #tpu.memory_space<vmem>>, vector<1x1xf32>,
    %c0_i32_38 = arith.constant 0 : i32
    %85 = arith.cmpi eq, %arg0, %c0_i32_38 : i32
    %86 = arith.extui %85 : i1 to i32
    %c0_i32_39 = arith.constant 0 : i32
    %87 = arith.cmpi ne, %86, %c0_i32_39 : i32
    scf.if %87 {
      %c0_40 = arith.constant 0 : index
      %c0_41 = arith.constant 0 : index
      %88 = vector.load %arg9[%c0_40, %c0_41] : memref<2x1xf32, #tpu.memory_space<vmem>>, vector<2x1xf32>
      %cst_42 = arith.constant 1.000000e+00 : f32
      %89 = vector.broadcast %cst_42 : f32 to vector<2x1xf32>
      %90 = arith.addf %88, %89 : vector<2x1xf32>
      %cst_43 = arith.constant 0.00194552529 : f32
      %91 = vector.broadcast %cst_43 : f32 to vector<2x1xf32>
      %92 = arith.mulf %90, %91 : vector<2x1xf32>
      %c0_44 = arith.constant 0 : index
      %c0_45 = arith.constant 0 : index
      %93 = vector.load %arg6[%c0_44, %c0_45] : memref<2x1xf32, #tpu.memory_space<vmem>>, vector<2x1xf32>
      %94 = arith.mulf %92, %93 : vector<2x1xf32>
      %cst_46 = arith.constant dense<0.000000e+00> : vector<1xf32>
      %95 = vector.multi_reduction <add>, %94, %cst_46 [0] : vector<2x1xf32> to vector<1xf32>
      %96 = vector.shape_cast %95 : vector<1xf32> to vector<1x1xf32>
      %c0_47 = arith.constant 0 : index
      %c0_48 = arith.constant 0 : index
      %97 = vector.load %arg8[%c0_47, %c0_48] : memref<1x1xf32, #tpu.memory_space<vmem>>, vector<1x1xf32>
      %cst_49 = arith.constant 5.120000e+02 : f32
      %98 = vector.broadcast %cst_49 : f32 to vector<1x1xf32>
      %99 = arith.mulf %98, %96 : vector<1x1xf32>
      %100 = arith.subf %97, %99 : vector<1x1xf32>
      %cst_50 = arith.constant 1.024000e+04 : f32
      %101 = vector.broadcast %cst_50 : f32 to vector<1x1xf32>
      %102 = arith.divf %100, %101 : vector<1x1xf32>
      %c0_51 = arith.constant 0 : index
      %c0_52 = arith.constant 0 : index
      %103 = vector.load %arg7[%c0_51, %c0_52] : memref<1x1xf32, #tpu.memory_space<vmem>>, vector<1x1xf32>
      tpu.vector_store %arg7[%c0_51, %c0_52], %102 {strides = array<i32>} : memref<1x1xf32, #tpu.memory_space<vmem>>, vector<1x1xf32>,
    } else {
    }
    return
  }
  func.func @transform_0(%arg0: i32) -> (i32, i32) {
    %c0_i32 = arith.constant 0 : i32
    %c0_i32_0 = arith.constant 0 : i32
    return %c0_i32, %arg0 : i32, i32
  }
  func.func @transform_1(%arg0: i32) -> (i32, i32) {
    %c0_i32 = arith.constant 0 : i32
    %c0_i32_0 = arith.constant 0 : i32
    return %c0_i32, %arg0 : i32, i32
  }
  func.func @transform_2(%arg0: i32) -> (i32, i32) {
    %c0_i32 = arith.constant 0 : i32
    %c0_i32_0 = arith.constant 0 : i32
    %c0_i32_1 = arith.constant 0 : i32
    return %c0_i32, %c0_i32_0 : i32, i32
  }
  func.func @transform_3(%arg0: i32) -> (i32, i32) {
    %c0_i32 = arith.constant 0 : i32
    %c0_i32_0 = arith.constant 0 : i32
    %c0_i32_1 = arith.constant 0 : i32
    return %c0_i32, %c0_i32_0 : i32, i32
  }
  func.func @transform_4(%arg0: i32) -> (i32, i32) {
    %c0_i32 = arith.constant 0 : i32
    %c0_i32_0 = arith.constant 0 : i32
    %c0_i32_1 = arith.constant 0 : i32
    return %c0_i32, %c0_i32_0 : i32, i32
  }
  func.func @transform_5(%arg0: i32) -> (i32, i32) {
    %c0_i32 = arith.constant 0 : i32
    %c0_i32_0 = arith.constant 0 : i32
    %c0_i32_1 = arith.constant 0 : i32
    return %c0_i32, %c0_i32_0 : i32, i32
  }
  func.func @transform_6(%arg0: i32) -> (i32, i32) {
    %c0_i32 = arith.constant 0 : i32
    %c0_i32_0 = arith.constant 0 : i32
    %c0_i32_1 = arith.constant 0 : i32
    return %c0_i32, %c0_i32_0 : i32, i32
  }
}

</mosaic_0001>

<bundles_post_ra>
// kernel: tpu_custom_call.1
= control target key start
LH: loop header
LB: loop body
LE: loop exit
PB: predicated region body
PF: predicated region fallthrough
CT: control target
= control target key end

     0   :  { %v36_v2 = vlaneseq  ;;  %v582_v3 = vmov 0   ;;  %v583_v7 = vmov 1966171168   ;;  %s899_s0 = inlined_call_operand.vmem [shape: f32[2,512], index: 0, kind: input, shape index: {}]   ;;  %s900_s1 = inlined_call_operand.vmem [shape: s32[1,512], index: 1, kind: input, shape index: {}]   ;;  %s901_s2 = inlined_call_operand.vmem [shape: f32[32,1], index: 2, kind: input, shape index: {}]   ;;  %s902_s3 = inlined_call_operand.vmem [shape: f32[32,1], index: 3, kind: input, shape index: {}]   ;;  %s903_s4 = inlined_call_operand.vmem [shape: f32[32,1], index: 4, kind: input, shape index: {}]   ;;  %s904_s5 = inlined_call_operand.vmem [shape: f32[2,1], index: 5, kind: input, shape index: {}]   ;;  %s905_s6 = inlined_call_operand.hbm [shape: f32[1,1], index: 6, kind: output, shape index: {}]  }
   0x1   :  { %v315_v0 = vld [vmem:[%s901_s2 + $0x10] sm:$0xff]  ;;  %v111_v1 = vld [vmem:[%s901_s2] sm:$0xff]  ;;  %557 = vset.pattern.permute.xlu1 %v582_v3  ;;  %556 = vset.pattern.permute.xlu0 %v582_v3  ;;  %v316_v5 = vld [vmem:[%s901_s2 + $0x18] sm:$0xff]  ;;  %v88_v8 = vunpack.c.l.s4 %v583_v7 }
   0x2   :  { %344 = vperm.xlu1 %557, %v315_v0   ;;  %140 = vperm.xlu0 %556, %v111_v1   ;;  %v37_v4 = vshrl.u32 %v36_v2, 7  ;;  %v112_v6 = vld [vmem:[%s901_s2 + $0x8] sm:$0xff]  ;;  %v32_v14 = vld [vmem:[%s900_s1] sm:$0xf] }
   0x3   :  { %v89_v13 = vunpack.c.0.s8 %v88_v8 }
   0x4   :  { %v633_v9 = vsub.s32 0, %v37_v4  ;;  %v635_v10 = vsub.s32 1, %v37_v4  ;;  %v637_v11 = vsub.s32 2, %v37_v4  ;;  %v639_v12 = vsub.s32 3, %v37_v4 }
   0x6   :  { %349 = vperm.xlu1 %557, %v316_v5   ;;  %145 = vperm.xlu0 %556, %v112_v6  }
   0x7   :  { %11 = vsyncpa [#allocation5], 0  ;;  %v114_v15 = vld [vmem:[%s902_s3 + $0x8] sm:$0xff]  ;;  %v113_v16 = vld [vmem:[%s902_s3] sm:$0xff]  ;;  %v41_v17 = vrot.slane %v32_v14, %v633_v9  ;;  %v45_v18 = vrot.slane %v32_v14, %v635_v10  ;;  %v49_v19 = vrot.slane %v32_v14, %v637_v11  ;;  %v92_v20 = vsub.s32 %v89_v13, %v37_v4 }
   0x8   :  { %v53_v21 = vrot.slane %v32_v14, %v639_v12  ;;  %v116_v22 = vld [vmem:[%s903_s4 + $0x8] sm:$0xff]  ;;  %v115_v23 = vld [vmem:[%s903_s4] sm:$0xff]  ;;  %v906_v24 = vmov 0.0   ;;  %v318_v32 = vld [vmem:[%s902_s3 + $0x18] sm:$0xff]  ;;  %vm33_vm4 = vcmp.ge.s32.totalorder %v32_v14, 0  ;;  %vm67_vm5 = vcmask 1041408  }
   0x9   :  { %vm54_vm0 = vcmp.eq.s32.totalorder %v41_v17, %v37_v4  ;;  %vm55_vm1 = vcmp.eq.s32.totalorder %v45_v18, %v37_v4  ;;  %vm56_vm2 = vcmp.eq.s32.totalorder %v49_v19, %v37_v4  ;;  %v317_v33 = vld [vmem:[%s902_s3 + $0x10] sm:$0xff]  ;;  %v320_v39 = vld [vmem:[%s903_s4 + $0x18] sm:$0xff]  ;;  %v546_v41 = vsel %vm33_vm4, 1.0, %v906_v24  ;;  %v551_v3 = vld [vmem:[%s899_s0 + $0x1] ss:$2 sm:$0xf] }
   0xa   :  { %248 = vperm.xlu1 %557, %v114_v15   ;;  %243 = vperm.xlu0 %556, %v113_v16   ;;  %v547_v25 = vsel %vm54_vm0, 1.0, %v906_v24  ;;  %v548_v26 = vsel %vm55_vm1, 1.0, %v906_v24  ;;  %v549_v27 = vsel %vm56_vm2, 1.0, %v906_v24  ;;  %vm57_vm3 = vcmp.eq.s32.totalorder %v53_v21, %v37_v4  ;;  %v319_v40 = vld [vmem:[%s903_s4 + $0x10] sm:$0xff] }
   0xb   :  { %v85_v28 = vcombine.low %v547_v25, %v548_v26  ;;  %v550_v29 = vsel %vm57_vm3, 1.0, %v906_v24  ;;  %v671_v35 = vrot.slane %v547_v25, %v633_v9  ;;  %v674_v36 = vrot.slane %v548_v26, %v633_v9  ;;  %v80_v4 = vld [vmem:[%s899_s0] ss:$2 sm:$0xf] }
   0xc   :  { %v86_v30 = vcombine.low %v549_v27, %v550_v29  ;;  %v677_v37 = vrot.slane %v549_v27, %v633_v9  ;;  %v696_v48 = vrot.slane %v547_v25, %v635_v10  ;;  %v699_v49 = vrot.slane %v548_v26, %v635_v10 }
   0xd   :  { %v93_v31 = vrot.slane %v85_v28, %v92_v20  ;;  %v702_v50 = vrot.slane %v549_v27, %v635_v10  ;;  %v714_v56 = vrot.slane %v550_v29, %v633_v9  ;;  %v720_v58 = vrot.slane %v550_v29, %v635_v10 }
   0xe   :  { %266 = vperm.xlu1 %557, %v116_v22   ;;  %261 = vperm.xlu0 %556, %v115_v23   ;;  %v100_v34 = vrot.slane %v86_v30, %v92_v20  ;;  %v68_v60 = vsel %vm67_vm5, %v547_v25, 0.0  ;;  %v69_v61 = vsel %vm67_vm5, %v548_v26, 0.0  ;;  %v71_v63 = vsel %vm67_vm5, %v549_v27, 0.0 }
   0xf   :  { %v70_v62 = vadd.f32 %v69_v61, %v68_v60  ;;  %v73_v1 = vsel %vm67_vm5, %v550_v29, 0.0  ;;  %vm30_vm6 = vcmask 1024   ;;  %v325_v5 = vrot.slane %v551_v3, %v633_v9 }
  0x10   :  { %v101_v38 = vcombine.low %v93_v31, %v100_v34  ;;  %v305_v44 = vcombine.high %v93_v31, %v100_v34  ;;  %31 = vst.msk [vmem:[#allocation3] sm:$0x3] %vm30_vm6, %v906_v24  ;;  %v329_v6 = vrot.slane %v551_v3, %v635_v10  ;;  %v333_v7 = vrot.slane %v551_v3, %v637_v11 }
  0x11   :  { %v72_v0 = vadd.f32 %v71_v63, %v70_v62  ;;  %v337_v8 = vrot.slane %v551_v3, %v639_v12  ;;  %v121_v13 = vrot.slane %v80_v4, %v633_v9  ;;  %v125_v14 = vrot.slane %v80_v4, %v635_v10 }
  0x12   :  { %452 = vperm.xlu1 %557, %v318_v32   ;;  %447 = vperm.xlu0 %556, %v317_v33   ;;  %v108_v42 = vrot.slane %v101_v38, %v92_v20  ;;  %v312_v51 = vrot.slane %v305_v44, %v92_v20  ;;  %v129_v15 = vrot.slane %v80_v4, %v637_v11  ;;  %vm28_vm7 = vcmask 0  }
  0x13   :  { %v74_v2 = vadd.f32 %v73_v1, %v72_v0  ;;  %v133_v16 = vrot.slane %v80_v4, %v639_v12 }
  0x14   :  { %v110_v43 = vsub.f32 %v546_v41, %v108_v42  ;;  %v314_v52 = vsub.f32 %v546_v41, %v312_v51 }
  0x16   :  { %470 = vperm.xlu1 %557, %v320_v39   ;;  %465 = vperm.xlu0 %556, %v319_v40   ;;  %v687_v45 = vrot.slane %v110_v43, %v633_v9  ;;  %v690_v46 = vrot.slane %v110_v43, %v635_v10  ;;  %v693_v47 = vrot.slane %v110_v43, %v637_v11 }
  0x17   :  { %v705_v53 = vrot.slane %v314_v52, %v633_v9  ;;  %v708_v54 = vrot.slane %v314_v52, %v635_v10  ;;  %v711_v55 = vrot.slane %v314_v52, %v637_v11  ;;  %v717_v57 = vrot.slane %v110_v43, %v639_v12 }
  0x18   :  { %v723_v59 = vrot.slane %v314_v52, %v639_v12 }
  0x1a   :  { %909 = vst [vmem:[#allocation7_spill] sm:$0xff] %v723_v59 }
  0x35   :  { %75 = vadd.xlane.f32.xlu0 %v74_v2 }
  0x81   :  { %v345_v17 = vpop.permute.xlu1 %344  ;;  %v141_v18 = vpop.permute.xlu0 %140 }
  0x82   :  { %v352_v19 = vsub.f32 %v325_v5, %v345_v17  ;;  %v353_v20 = vsub.f32 %v329_v6, %v345_v17  ;;  %v354_v21 = vsub.f32 %v333_v7, %v345_v17  ;;  %v355_v22 = vsub.f32 %v337_v8, %v345_v17 }
  0x83   :  { %v148_v23 = vsub.f32 %v121_v13, %v141_v18  ;;  %v149_v25 = vsub.f32 %v125_v14, %v141_v18  ;;  %v150_v26 = vsub.f32 %v129_v15, %v141_v18  ;;  %v151_v27 = vsub.f32 %v133_v16, %v141_v18 }
  0x84   :  { %v360_v28 = vsub.f32 1.0, %v352_v19  ;;  %v361_v29 = vsub.f32 1.0, %v353_v20  ;;  %v362_v30 = vsub.f32 1.0, %v354_v21  ;;  %v363_v9 = vsub.f32 1.0, %v355_v22 }
  0x85   :  { %v741_v31 = vadd.f32 1.0, %v352_v19  ;;  %v743_v10 = vadd.f32 1.0, %v353_v20  ;;  %v745_v11 = vadd.f32 1.0, %v354_v21  ;;  %v747_v12 = vadd.f32 1.0, %v355_v22  ;;  %v350_v32 = vpop.permute.xlu1 %349  ;;  %v146_v40 = vpop.permute.xlu0 %145 }
  0x86   :  { %v749_v33 = vmax.f32 %v360_v28, 0.0  ;;  %v751_v34 = vmax.f32 %v361_v29, 0.0  ;;  %v753_v38 = vmax.f32 %v362_v30, 0.0  ;;  %v755_v39 = vmax.f32 %v363_v9, 0.0 }
  0x87   :  { %v156_v51 = vsub.f32 1.0, %v148_v23  ;;  %v157_v52 = vsub.f32 1.0, %v149_v25  ;;  %v158_v60 = vsub.f32 1.0, %v150_v26  ;;  %v159_v61 = vsub.f32 1.0, %v151_v27 }
  0x88   :  { %v761_v62 = vadd.f32 1.0, %v148_v23  ;;  %v763_v63 = vadd.f32 1.0, %v149_v25  ;;  %v765_v0 = vadd.f32 1.0, %v150_v26  ;;  %v767_v1 = vadd.f32 1.0, %v151_v27 }
  0x89   :  { %v164_v2 = vmax.f32 %v156_v51, 0.0  ;;  %v165_v3 = vmax.f32 %v157_v52, 0.0  ;;  %v166_v4 = vmax.f32 %v158_v60, 0.0  ;;  %v769_v17 = vmax.f32 %v159_v61, 0.0  ;;  %v775_v22 = vpop.permute.xlu1 %248  ;;  %v777_v28 = vpop.permute.xlu0 %243 }
  0x8a   :  { %v356_v23 = vsub.f32 %v325_v5, %v350_v32  ;;  %v357_v25 = vsub.f32 %v329_v6, %v350_v32  ;;  %v358_v26 = vsub.f32 %v333_v7, %v350_v32  ;;  %v359_v27 = vsub.f32 %v337_v8, %v350_v32 }
  0x8b   :  { %v152_v29 = vsub.f32 %v121_v13, %v146_v40  ;;  %v153_v30 = vsub.f32 %v125_v14, %v146_v40  ;;  %v154_v9 = vsub.f32 %v129_v15, %v146_v40  ;;  %v155_v51 = vsub.f32 %v133_v16, %v146_v40 }
  0x8c   :  { %v364_v52 = vsub.f32 1.0, %v356_v23  ;;  %v365_v60 = vsub.f32 1.0, %v357_v25  ;;  %v366_v61 = vsub.f32 1.0, %v358_v26  ;;  %v367_v24 = vsub.f32 1.0, %v359_v27 }
  0x8d   :  { %v779_v44 = vadd.f32 1.0, %v356_v23  ;;  %v781_v43 = vadd.f32 1.0, %v357_v25  ;;  %v783_v21 = vadd.f32 1.0, %v358_v26  ;;  %v785_v5 = vadd.f32 1.0, %v359_v27  ;;  %v793_v40 = vpop.permute.xlu1 %266  ;;  %v795_v42 = vpop.permute.xlu0 %261 }
  0x8e   :  { %v372_v6 = vmax.f32 %v364_v52, 0.0  ;;  %v373_v7 = vmax.f32 %v365_v60, 0.0  ;;  %v374_v8 = vmax.f32 %v366_v61, 0.0  ;;  %v787_v32 = vmax.f32 %v367_v24, 0.0 }
  0x8f   :  { %910 = vst [vmem:[#allocation8_spill] sm:$0xff] %v785_v5  ;;  %v412_v13 = vmax.f32 %v779_v44, 0.0  ;;  %v413_v14 = vmax.f32 %v781_v43, 0.0  ;;  %v414_v15 = vmax.f32 %v783_v21, 0.0  ;;  %v160_v23 = vsub.f32 1.0, %v152_v29 }
  0x90   :  { %911 = vst [vmem:[#allocation9_spill] sm:$0xff] %v787_v32  ;;  %v161_v25 = vsub.f32 1.0, %v153_v30  ;;  %v162_v26 = vsub.f32 1.0, %v154_v9  ;;  %v163_v27 = vsub.f32 1.0, %v155_v51  ;;  %v200_v52 = vadd.f32 1.0, %v152_v29 }
  0x91   :  { %v201_v60 = vadd.f32 1.0, %v153_v30  ;;  %v202_v24 = vadd.f32 1.0, %v154_v9  ;;  %v797_v61 = vadd.f32 1.0, %v155_v51  ;;  %v168_v44 = vmax.f32 %v160_v23, 0.0 }
  0x92   :  { %v169_v41 = vmax.f32 %v161_v25, 0.0  ;;  %v170_v43 = vmax.f32 %v162_v26, 0.0  ;;  %v171_v20 = vmax.f32 %v163_v27, 0.0  ;;  %v208_v21 = vmax.f32 %v200_v52, 0.0  ;;  %v808_v25 = vpop.permute.xlu1 %452 }
  0x93   :  { %v209_v19 = vmax.f32 %v201_v60, 0.0  ;;  %v210_v16 = vmax.f32 %v202_v24, 0.0  ;;  %v211_v18 = vmax.f32 %v797_v61, 0.0  ;;  %v192_v5 = vmul.f32 %v671_v35, %v168_v44  ;;  %v448_v60 = vpop.permute.xlu0 %447 }
  0x94   :  { %v193_v32 = vmul.f32 %v674_v36, %v169_v41  ;;  %v194_v59 = vmul.f32 %v677_v37, %v170_v43  ;;  %v188_v29 = vmul.f32 %v671_v35, %v164_v2  ;;  %v189_v30 = vmul.f32 %v674_v36, %v165_v3 }
  0x95   :  { %v190_v9 = vmul.f32 %v677_v37, %v166_v4  ;;  %v237_v51 = vmul.f32 %v687_v45, %v208_v21  ;;  %v238_v23 = vmul.f32 %v690_v46, %v209_v19  ;;  %v255_v26 = vmul.f32 %v775_v22, %v192_v5 }
  0x96   :  { %v256_v27 = vmul.f32 %v775_v22, %v193_v32  ;;  %v257_v41 = vmul.f32 %v775_v22, %v194_v59  ;;  %v251_v52 = vmul.f32 %v777_v28, %v188_v29  ;;  %v252_v35 = vmul.f32 %v777_v28, %v189_v30 }
  0x97   :  { %v253_v36 = vmul.f32 %v777_v28, %v190_v9  ;;  %v239_v37 = vmul.f32 %v693_v47, %v210_v16  ;;  %v273_v2 = vmul.f32 %v793_v40, %v237_v51  ;;  %v274_v3 = vmul.f32 %v793_v40, %v238_v23  ;;  %v466_v51 = vpop.permute.xlu0 %465 }
  0x98   :  { %v912_v4 = vmax.f32 %v761_v62, 0.0  ;;  %v913_v5 = vmax.f32 %v763_v63, 0.0  ;;  %v914_v32 = vmax.f32 %v765_v0, 0.0  ;;  %v396_v16 = vmul.f32 %v696_v48, %v372_v6 }
  0x99   :  { %v275_v61 = vmul.f32 %v793_v40, %v239_v37  ;;  %v397_v44 = vmul.f32 %v699_v49, %v373_v7  ;;  %v398_v43 = vmul.f32 %v702_v50, %v374_v8  ;;  %v393_v6 = vmul.f32 %v699_v49, %v751_v34  ;;  %v471_v7 = vpop.permute.xlu1 %470 }
  0x9a   :  { %v233_v19 = vmul.f32 %v687_v45, %v912_v4  ;;  %v234_v59 = vmul.f32 %v690_v46, %v913_v5  ;;  %v235_v24 = vmul.f32 %v693_v47, %v914_v32  ;;  %v392_v46 = vmul.f32 %v696_v48, %v749_v33 }
  0x9b   :  { %v459_v0 = vmul.f32 %v808_v25, %v396_v16  ;;  %v460_v47 = vmul.f32 %v808_v25, %v397_v44  ;;  %v461_v21 = vmul.f32 %v808_v25, %v398_v43  ;;  %v394_v8 = vmul.f32 %v702_v50, %v753_v38 }
  0x9c   :  { %v269_v62 = vmul.f32 %v795_v42, %v233_v19  ;;  %v270_v45 = vmul.f32 %v795_v42, %v234_v59  ;;  %v271_v63 = vmul.f32 %v795_v42, %v235_v24  ;;  %v455_v29 = vmul.f32 %v448_v60, %v392_v46 }
  0x9d   :  { %v441_v30 = vmul.f32 %v705_v53, %v412_v13  ;;  %v442_v9 = vmul.f32 %v708_v54, %v413_v14  ;;  %v456_v48 = vmul.f32 %v448_v60, %v393_v6  ;;  %v443_v33 = vmul.f32 %v711_v55, %v414_v15 }
  0x9e   :  { %v915_v23 = vmax.f32 %v741_v31, 0.0  ;;  %v916_v4 = vmax.f32 %v743_v10, 0.0  ;;  %v457_v34 = vmul.f32 %v448_v60, %v394_v8  ;;  %v917_v38 = vmax.f32 %v745_v11, 0.0 }
  0x9f   :  { %v477_v19 = vmul.f32 %v471_v7, %v441_v30  ;;  %v478_v50 = vmul.f32 %v471_v7, %v442_v9  ;;  %v479_v14 = vmul.f32 %v471_v7, %v443_v33  ;;  %v195_v15 = vmul.f32 %v714_v56, %v171_v20 }
  0xa0   :  { %v437_v37 = vmul.f32 %v705_v53, %v915_v23  ;;  %v438_v49 = vmul.f32 %v708_v54, %v916_v4  ;;  %v439_v13 = vmul.f32 %v711_v55, %v917_v38  ;;  %v240_v31 = vmul.f32 %v717_v57, %v211_v18 }
  0xa1   :  { %v281_v53 = vadd.f32 %v273_v2, %v255_v26  ;;  %v282_v24 = vadd.f32 %v274_v3, %v256_v27  ;;  %v258_v10 = vmul.f32 %v775_v22, %v195_v15  ;;  %v283_v54 = vadd.f32 %v275_v61, %v257_v41 }
  0xa2   :  { %v473_v5 = vmul.f32 %v466_v51, %v437_v37  ;;  %v474_v59 = vmul.f32 %v466_v51, %v438_v49  ;;  %v475_v32 = vmul.f32 %v466_v51, %v439_v13  ;;  %v191_v16 = vmul.f32 %v714_v56, %v769_v17  ;;  %v920_v17 = vld [vmem:[#allocation7_spill] sm:$0xff] }
  0xa3   :  { %v918_v11 = vmax.f32 %v767_v1, 0.0  ;;  %v276_v44 = vmul.f32 %v793_v40, %v240_v31  ;;  %v290_v43 = vadd.f32 %v282_v24, %v281_v53  ;;  %v277_v46 = vadd.f32 %v269_v62, %v251_v52 }
  0xa4   :  { %v278_v20 = vadd.f32 %v270_v45, %v252_v35  ;;  %v254_v6 = vmul.f32 %v777_v28, %v191_v16  ;;  %v279_v26 = vadd.f32 %v271_v63, %v253_v36  ;;  %v395_v22 = vmul.f32 %v720_v58, %v755_v39  ;;  %v921_v36 = vld [vmem:[#allocation9_spill] sm:$0xff]  ;;  %v922_v39 = vld [vmem:[#allocation8_spill] sm:$0xff] }
  0xa5   :  { %v236_v55 = vmul.f32 %v717_v57, %v918_v11  ;;  %v284_v27 = vadd.f32 %v276_v44, %v258_v10  ;;  %v291_v41 = vadd.f32 %v290_v43, %v283_v54  ;;  %v919_v1 = vmax.f32 %v747_v12, 0.0 }
  0xa6   :  { %v285_v56 = vadd.f32 %v278_v20, %v277_v46  ;;  %v458_v40 = vmul.f32 %v448_v60, %v395_v22  ;;  %v481_v3 = vadd.f32 %v473_v5, %v455_v29  ;;  %v482_v52 = vadd.f32 %v474_v59, %v456_v48 }
  0xa7   :  { %v272_v18 = vmul.f32 %v795_v42, %v236_v55  ;;  %v440_v57 = vmul.f32 %v920_v17, %v919_v1  ;;  %v292_v35 = vadd.f32 %v291_v41, %v284_v27  ;;  %v483_v62 = vadd.f32 %v475_v32, %v457_v34  ;;  %v66_v34 = vld [vmem:[#allocation3] sm:$0x3] }
  0xa8   :  { %v286_v61 = vadd.f32 %v285_v56, %v279_v26  ;;  %v489_v42 = vadd.f32 %v482_v52, %v481_v3  ;;  %v399_v45 = vmul.f32 %v720_v58, %v921_v36  ;;  %v923_v63 = vmax.f32 %v922_v39, 0.0 }
  0xa9   :  { %v280_v2 = vadd.f32 %v272_v18, %v254_v6  ;;  %v476_v28 = vmul.f32 %v466_v51, %v440_v57  ;;  %v485_v30 = vadd.f32 %v477_v19, %v459_v0  ;;  %293 = vadd.xlane.f32.xlu0 %v292_v35  ;;  %v486_v33 = vadd.f32 %v478_v50, %v460_v47  ;;  %v517_v19 = vld [vmem:[%s904_s5] sm:$0x3]  ;;  %s585_s5 = smov [#allocation4]  }
  0xaa   :  { %v444_v8 = vmul.f32 %v920_v17, %v923_v63  ;;  %v487_v60 = vadd.f32 %v479_v14, %v461_v21  ;;  %v490_v29 = vadd.f32 %v489_v42, %v483_v62  ;;  %v462_v48 = vmul.f32 %v808_v25, %v399_v45  ;;  %s538_s24 = sshll.u32 %s585_s5, 4  ;;  %s539_s24 = int_to_ptr.vmem [resolvable:$true] %s538_s24 }
  0xab   :  { %v287_v12 = vadd.f32 %v286_v61, %v280_v2  ;;  %v484_v9 = vadd.f32 %v476_v28, %v458_v40  ;;  %v494_v51 = vadd.f32 %v486_v33, %v485_v30  ;;  %v924_v47 = vmov 0.0   ;;  %s558_s25 = scalar_lea.vmem %s539_s24, 16  ;;  %s562_s26 = scalar_lea.vmem %s539_s24, 32 }
  0xac   :  { %v480_v23 = vmul.f32 %v471_v7, %v444_v8  ;;  %29 = vst.msk [vmem:[#allocation2] sm:$0x1] %vm28_vm7, %v924_v47  ;;  %p559_p0 = scmp.ne.s32.totalorder %s539_s24, %s558_s25  ;;  %p563_p1 = scmp.lt.s32.totalorder %s539_s24, %s539_s24 }
  0xad   :  { %288 = vadd.xlane.f32.xlu1 %v287_v12  ;;  %v491_v37 = vadd.f32 %v490_v29, %v484_v9  ;;  %v495_v49 = vadd.f32 %v494_v51, %v487_v60  ;;  %p564_p2 = scmp.lt.s32.totalorder %s562_s26, %s558_s25 }
  0xae   :  { %v488_v4 = vadd.f32 %v480_v23, %v462_v48 }
  0xaf   :  { %492 = vadd.xlane.f32.xlu0 %v491_v37  ;;  %p565_p3 = por %p564_p2, %p563_p1 }
  0xb0   :  { %v496_v58 = vadd.f32 %v495_v49, %v488_v4 }
  0xb1   :  { %p566_p4 = pnand %p565_p3, %p559_p0 }
  0xb2   :  { %497 = vadd.xlane.f32.xlu1 %v496_v58 }
  0xb3   :  { %v507_v41 = vld [vmem:[#allocation2] sm:$0x1] }
  0xc2   :  { %v76_v38 = vpop.xlane.xlu0 %75 }
  0xc3   :  { %v77_v0 = vadd.f32 %v76_v38, %v66_v34 }
  0xc5   :  { %79 = vst.msk [vmem:[#allocation3] sm:$0x3] %vm30_vm6, %v77_v0 }
  0xcc   :  { %v514_v21 = vld [vmem:[#allocation3] sm:$0x3] }
  0xcd   :  { %v515_v25 = vadd.f32 1.0, %v514_v21 }
  0xcf   :  { %v516_v7 = vmul.f32 0.0019455253, %v515_v25 }
  0xd1   :  { %v518_v14 = vmul.f32 %v517_v19, %v516_v7 }
  0xd3   :  { %v519_v32 = vsel %vm30_vm6, %v518_v14, 0.0 }
  0xd4   :  { %v520_v54 = vrot.slane %v519_v32, 4 }
  0xd6   :  { %v521_v44 = vadd.f32 %v520_v54, %v519_v32 }
  0xd8   :  { %v522_v6 = vrot.slane %v521_v44, 2 }
  0xda   :  { %v523_v27 = vadd.f32 %v522_v6, %v521_v44 }
  0xdc   :  { %v524_v17 = vrot.slane %v523_v27, 1 }
  0xde   :  { %v525_v57 = vadd.f32 %v524_v17, %v523_v27 }
  0xe0   :  { %v527_v2 = vmul.f32 512.0, %v525_v57 }
 0x136   :  { %v294_v50 = vpop.xlane.xlu0 %293 }
 0x13a   :  { %v289_v13 = vpop.xlane.xlu1 %288 }
 0x13b   :  { %v295_v5 = vadd.f32 %v294_v50, %v289_v13 }
 0x13c   :  { %v493_v15 = vpop.xlane.xlu0 %492 }
 0x13d   :  { %v296_v59 = vrot.slane %v295_v5, 4 }
 0x13f   :  { %v297_v31 = vadd.f32 %v296_v59, %v295_v5  ;;  %v498_v53 = vpop.xlane.xlu1 %497 }
 0x140   :  { %v499_v10 = vadd.f32 %v498_v53, %v493_v15 }
 0x141   :  { %v298_v24 = vrot.slane %v297_v31, 2 }
 0x142   :  { %v500_v16 = vrot.slane %v499_v10, 4 }
 0x143   :  { %v299_v11 = vadd.f32 %v298_v24, %v297_v31 }
 0x144   :  { %v501_v55 = vadd.f32 %v500_v16, %v499_v10 }
 0x145   :  { %v300_v46 = vrot.slane %v299_v11, 1 }
 0x146   :  { %v502_v43 = vrot.slane %v501_v55, 2 }
 0x147   :  { %v301_v26 = vadd.f32 %v300_v46, %v299_v11 }
 0x148   :  { %v503_v20 = vadd.f32 %v502_v43, %v501_v55 }
 0x14a   :  { %v504_v18 = vrot.slane %v503_v20, 1 }
 0x14c   :  { %v505_v22 = vadd.f32 %v504_v18, %v503_v20 }
 0x14e   :  { %v506_v56 = vadd.f32 %v505_v22, %v301_v26 }
 0x150   :  { %v508_v1 = vadd.f32 %v507_v41, %v506_v56 }
 0x152   :  { %510 = vst.msk [vmem:[#allocation2] sm:$0x1] %vm28_vm7, %v508_v1 }
 0x159   :  { %v526_v40 = vld [vmem:[#allocation2] sm:$0x1] }
 0x15a   :  { %v528_v3 = vsub.f32 %v526_v40, %v527_v2 }
 0x15c   :  { %v530_v52 = vmul.f32 9.765625e-05, %v528_v3 }
 0x15e   :  { %531 = vst.msk [vmem:[#allocation4] sm:$0x1] %vm28_vm7, %v530_v52 }
 0x15f   :  { %569 = shalt.err (!%p566_p4)
}
 0x160   :  { %s570_s29 = scalar_lea.hbm %s905_s6, 16 }
 0x161   :  { %p571_p5 = scmp.ne.s32.totalorder %s905_s6, %s570_s29  ;;  %p574_p6 = scmp.lt.u32.totalorder %s570_s29, %s905_s6 }
 0x163   :  { %p576_p7 = pnand %p574_p6, %p571_p5 }
 0x165   :  { %579 = shalt.err (!%p576_p7)
}
 0x166   :  { %541 = dma.vmem_to_hbm [thread:$0]  %s539_s24, 16, %s905_s6, [#allocation5]  }
 0x167   :  { %580 = dma.done.wait [#allocation5], 16  }
 0x168   :  { %581 = vsyncadd [#allocation5], 4294967280 }
 0x169   :  { %545 = vsyncpa [#allocation5], 1 }

</bundles_post_ra>
